<compile_context>
chip_gen: v7x
topology: tpu7x:2x2x1
jax: 0.10.0
libtpu: 0.0.40
codegen_flags: <defaults>
</compile_context>

<pallas_src>
import functools

import jax
import jax.numpy as jnp
from jax.experimental import pallas as pl
from jax.experimental.pallas import tpu as pltpu


def _round_up(x, m):
    return ((x + m - 1) // m) * m


def _make_combined_basis(n_fft):
    """Windowed, normalization-folded real-DFT basis with cos/sin packed into one
    lane-dense (n_fft, 2*kp) weight: cos in lanes [0, n_freq), sin in lanes
    [kp, kp+n_freq), zeros elsewhere. 2*kp is a multiple of 128."""
    n_freq = n_fft // 2 + 1
    kp = _round_up(n_freq, 64)
    n = jnp.arange(n_fft, dtype=jnp.float32)
    # torch.hann_window default (periodic=True): 0.5 * (1 - cos(2*pi*k/n_fft))
    win = 0.5 - 0.5 * jnp.cos(2.0 * jnp.pi * n / n_fft)
    norm = jnp.sqrt(jnp.sum(win * win))  # torchaudio normalized=True ("window")
    k = jnp.arange(n_freq, dtype=jnp.float32)[None, :]
    ang = 2.0 * jnp.pi * n[:, None] * k / n_fft
    cos_b = (win[:, None] * jnp.cos(ang)) / norm
    sin_b = (win[:, None] * jnp.sin(ang)) / norm  # sign irrelevant (magnitude)
    basis = jnp.zeros((n_fft, 2 * kp), jnp.float32)
    basis = basis.at[:, :n_freq].set(cos_b)
    basis = basis.at[:, kp:kp + n_freq].set(sin_b)
    return basis, kp, n_freq


def _sss_kernel(ft_ref, fp_ref, basis_ref, out_ref, acc_ref, *,
                t_true, n_freq, kp, eps):
    t_idx = pl.program_id(1)
    tile_t = ft_ref.shape[1]

    @pl.when(t_idx == 0)
    def _init():
        acc_ref[0] = jnp.float32(0.0)
        acc_ref[1] = jnp.float32(0.0)
        acc_ref[2] = jnp.float32(0.0)

    ft = ft_ref[0]                  # (tile_t, n_fft) f32
    fp = fp_ref[0]                  # (tile_t, n_fft) f32
    basis = basis_ref[...]          # (n_fft, 2*kp) f32

    # One MXU matmul per operand: lanes [0,kp) hold the cos projection,
    # lanes [kp,2kp) hold the sin projection.
    pt = jnp.dot(ft, basis, preferred_element_type=jnp.float32)   # (tile_t, 2*kp)
    pp = jnp.dot(fp, basis, preferred_element_type=jnp.float32)

    sq_t = pt * pt
    sq_p = pp * pp
    # Fold sin half onto cos half via an XLU rotate (no lane slice / relayout).
    mag2_t = sq_t + pltpu.roll(sq_t, shift=kp, axis=1)
    mag2_p = sq_p + pltpu.roll(sq_p, shift=kp, axis=1)

    s_t = jnp.sqrt(mag2_t) + eps
    s_p = jnp.sqrt(mag2_p) + eps

    diff = s_t - s_p
    ssum = s_t + s_p
    abs_log = jnp.abs(jnp.log(s_t / s_p))   # one log per element instead of two

    # Validity mask: real frequency lanes and real (non-padded) frames only.
    lane = jax.lax.broadcasted_iota(jnp.int32, diff.shape, 1)
    row = jax.lax.broadcasted_iota(jnp.int32, diff.shape, 0)
    valid = (lane < n_freq) & ((t_idx * tile_t + row) < t_true)
    zero = jnp.zeros_like(diff)

    acc_ref[0] += jnp.sum(jnp.where(valid, diff * diff, zero))
    acc_ref[1] += jnp.sum(jnp.where(valid, ssum * ssum, zero))
    acc_ref[2] += jnp.sum(jnp.where(valid, abs_log, zero))

    @pl.when(t_idx == pl.num_programs(1) - 1)
    def _finalize():
        lane_o = jax.lax.broadcasted_iota(jnp.int32, (1, 1, 128), 2)
        out_ref[...] = (jnp.where(lane_o == 0, acc_ref[0], 0.0)
                        + jnp.where(lane_o == 1, acc_ref[1], 0.0)
                        + jnp.where(lane_o == 2, acc_ref[2], 0.0))


def sss_loss(x_true, x_pred, *, n_fft=111, alpha=1.0, overlap=0.0, eps=1e-7,
             tile_t=512):
    assert x_true.shape == x_pred.shape and x_true.ndim == 2
    hop = int(n_fft * (1 - overlap))
    B, L = x_true.shape
    T = 1 + (L - n_fft) // hop

    x_true = x_true.astype(jnp.float32)
    x_pred = x_pred.astype(jnp.float32)

    if hop == n_fft:
        # center=False, non-overlapping hop -> framing is a pure reshape.
        frames_t = x_true[:, : T * n_fft].reshape(B, T, n_fft)
        frames_p = x_pred[:, : T * n_fft].reshape(B, T, n_fft)
    else:
        # TODO(synk): for overlap>0, frame inside the kernel with overlapping
        # pl.ds windows on the raw (B, L) signal instead of this HBM gather.
        idx = (jnp.arange(T) * hop)[:, None] + jnp.arange(n_fft)[None, :]
        frames_t = x_true[:, idx]
        frames_p = x_pred[:, idx]

    basis, kp, n_freq = _make_combined_basis(n_fft)

    # Time-tile size: multiple of 8 sublanes, capped so small T stays one tile.
    tile = max(8, min(int(tile_t), _round_up(T, 8)))
    t_pad = _round_up(T, tile)
    if t_pad != T:
        pad = ((0, 0), (0, t_pad - T), (0, 0))
        frames_t = jnp.pad(frames_t, pad)   # padded frames masked in-kernel
        frames_p = jnp.pad(frames_p, pad)

    grid = (B, t_pad // tile)
    kernel = functools.partial(_sss_kernel, t_true=T, n_freq=n_freq, kp=kp,
                               eps=float(eps))

    partials = pl.pallas_call(
        kernel,
        out_shape=jax.ShapeDtypeStruct((B, 1, 128), jnp.float32),
        grid_spec=pltpu.PrefetchScalarGridSpec(
            num_scalar_prefetch=0,
            grid=grid,
            in_specs=[
                pl.BlockSpec((1, tile, n_fft), lambda b, t: (b, t, 0)),
                pl.BlockSpec((1, tile, n_fft), lambda b, t: (b, t, 0)),
                pl.BlockSpec((n_fft, 2 * kp), lambda b, t: (0, 0)),
            ],
            out_specs=pl.BlockSpec((1, 1, 128), lambda b, t: (b, 0, 0)),
            scratch_shapes=[pltpu.SMEM((3,), jnp.float32)],
        ),
        compiler_params=pltpu.CompilerParams(
            dimension_semantics=("parallel", "arbitrary"),
            vmem_limit_bytes=32 * 1024 * 1024,
        ),
    )(frames_t, frames_p, basis)

    sum_diff2 = partials[:, 0, 0]
    sum_ssum2 = partials[:, 0, 1]
    sum_abslog = partials[:, 0, 2]
    converge_term = jnp.mean(jnp.sqrt(sum_diff2) / jnp.sqrt(sum_ssum2))
    log_term = jnp.sum(sum_abslog) / (B * T * n_freq)
    return converge_term + alpha * log_term


def _sss_loss_ref(x_true, x_pred, *, n_fft=111, alpha=1.0, overlap=0.0, eps=1e-7):
    """Plain-JAX reference mirroring the PyTorch module (for validation)."""
    hop = int(n_fft * (1 - overlap))
    B, L = x_true.shape
    T = 1 + (L - n_fft) // hop
    idx = (jnp.arange(T) * hop)[:, None] + jnp.arange(n_fft)[None, :]
    frames_t = x_true.astype(jnp.float32)[:, idx]
    frames_p = x_pred.astype(jnp.float32)[:, idx]
    n_freq = n_fft // 2 + 1
    n = jnp.arange(n_fft, dtype=jnp.float32)
    win = 0.5 - 0.5 * jnp.cos(2.0 * jnp.pi * n / n_fft)
    norm = jnp.sqrt(jnp.sum(win * win))
    ang = 2.0 * jnp.pi * n[:, None] * jnp.arange(n_freq, dtype=jnp.float32)[None, :] / n_fft
    cos_b = win[:, None] * jnp.cos(ang) / norm
    sin_b = win[:, None] * jnp.sin(ang) / norm
    re_t = jnp.einsum('btn,nk->btk', frames_t, cos_b)
    im_t = jnp.einsum('btn,nk->btk', frames_t, sin_b)
    re_p = jnp.einsum('btn,nk->btk', frames_p, cos_b)
    im_p = jnp.einsum('btn,nk->btk', frames_p, sin_b)
    s_t = jnp.sqrt(re_t * re_t + im_t * im_t) + eps
    s_p = jnp.sqrt(re_p * re_p + im_p * im_p) + eps
    num = jnp.sqrt(jnp.sum((s_t - s_p) ** 2, axis=(1, 2)))
    den = jnp.sqrt(jnp.sum((s_t + s_p) ** 2, axis=(1, 2)))
    converge = jnp.mean(num / den)
    log_term = jnp.mean(jnp.abs(jnp.log(s_t) - jnp.log(s_p)))
    return converge + alpha * log_term


if __name__ == "__main__":
    n_fft = 111
    B = 2
    T = 16                       # number of STFT frames
    L = T * n_fft                # hop == n_fft (overlap = 0), center=False

    key = jax.random.PRNGKey(0)
    k1, k2 = jax.random.split(key)
    x_true = jax.random.normal(k1, (B, L), dtype=jnp.float32)
    x_pred = x_true + 0.1 * jax.random.normal(k2, (B, L), dtype=jnp.float32)

    loss = sss_loss(x_true, x_pred, n_fft=n_fft, alpha=1.0, overlap=0.0, eps=1e-7)
    loss = jax.block_until_ready(loss)
    assert loss.shape == () and bool(jnp.isfinite(loss))

    ref = jax.block_until_ready(
        _sss_loss_ref(x_true, x_pred, n_fft=n_fft, alpha=1.0, overlap=0.0, eps=1e-7))
    assert abs(float(loss) - float(ref)) <= 1e-3 * max(1.0, abs(float(ref))), (loss, ref)

    print("KERNEL_OK")
</pallas_src>

<mosaic_0001>
module attributes {stable_mosaic.version = 11 : i64} {
  func.func @_sss_kernel(%arg0: i32, %arg1: i32, %arg2: memref<1x16x111xf32, #tpu.memory_space<vmem>>, %arg3: memref<1x16x111xf32, #tpu.memory_space<vmem>>, %arg4: memref<111x128xf32, #tpu.memory_space<vmem>>, %arg5: memref<1x1x128xf32, #tpu.memory_space<vmem>>, %arg6: memref<3xf32, #tpu.memory_space<smem>>) attributes {dimension_semantics = [#tpu.dimension_semantics<parallel>, #tpu.dimension_semantics<arbitrary>], iteration_bounds = array<i64: 2, 1>, scalar_prefetch = 0 : i64, scratch_operands = 1 : i64, tpu.core_type = #tpu.core_type<tc>, window_params = [{transform_indices = @transform_0, window_bounds = array<i64: 1, 16, 111>}, {transform_indices = @transform_1, window_bounds = array<i64: 1, 16, 111>}, {pipeline_mode = #tpu.pipeline_mode<synchronous>, transform_indices = @transform_2, window_bounds = array<i64: 111, 128>}, {transform_indices = @transform_3, window_bounds = array<i64: 1, 1, 128>}]} {
    %c0_i32 = arith.constant 0 : i32
    %0 = arith.cmpi eq, %arg1, %c0_i32 : i32
    %1 = arith.extui %0 : i1 to i32
    %c0_i32_0 = arith.constant 0 : i32
    %2 = arith.cmpi ne, %1, %c0_i32_0 : i32
    scf.if %2 {
      %cst_23 = arith.constant 0.000000e+00 : f32
      %c0_24 = arith.constant 0 : index
      %67 = memref.load %arg6[%c0_24] : memref<3xf32, #tpu.memory_space<smem>>
      memref.store %cst_23, %arg6[%c0_24] : memref<3xf32, #tpu.memory_space<smem>>
      %cst_25 = arith.constant 0.000000e+00 : f32
      %c1_26 = arith.constant 1 : index
      %68 = memref.load %arg6[%c1_26] : memref<3xf32, #tpu.memory_space<smem>>
      memref.store %cst_25, %arg6[%c1_26] : memref<3xf32, #tpu.memory_space<smem>>
      %cst_27 = arith.constant 0.000000e+00 : f32
      %c2_28 = arith.constant 2 : index
      %69 = memref.load %arg6[%c2_28] : memref<3xf32, #tpu.memory_space<smem>>
      memref.store %cst_27, %arg6[%c2_28] : memref<3xf32, #tpu.memory_space<smem>>
    } else {
    }
    %c0 = arith.constant 0 : index
    %c0_1 = arith.constant 0 : index
    %c0_2 = arith.constant 0 : index
    %3 = vector.load %arg2[%c0, %c0_1, %c0_2] : memref<1x16x111xf32, #tpu.memory_space<vmem>>, vector<1x16x111xf32>
    %4 = vector.shape_cast %3 : vector<1x16x111xf32> to vector<16x111xf32>
    %c0_3 = arith.constant 0 : index
    %c0_4 = arith.constant 0 : index
    %c0_5 = arith.constant 0 : index
    %5 = vector.load %arg3[%c0_3, %c0_4, %c0_5] : memref<1x16x111xf32, #tpu.memory_space<vmem>>, vector<1x16x111xf32>
    %6 = vector.shape_cast %5 : vector<1x16x111xf32> to vector<16x111xf32>
    %c0_6 = arith.constant 0 : index
    %c0_7 = arith.constant 0 : index
    %7 = vector.load %arg4[%c0_6, %c0_7] : memref<111x128xf32, #tpu.memory_space<vmem>>, vector<111x128xf32>
    %cst = arith.constant dense<0.000000e+00> : vector<16x128xf32>
    %8 = tpu.matmul %4, %7, %cst {dimension_numbers = #tpu.dot_dimension_numbers<[1], [0], [0], [1], [0, 0, 1, 1], [], []>} : vector<16x111xf32>, vector<111x128xf32>, vector<16x128xf32> -> vector<16x128xf32>
    %cst_8 = arith.constant dense<0.000000e+00> : vector<16x128xf32>
    %9 = tpu.matmul %6, %7, %cst_8 {dimension_numbers = #tpu.dot_dimension_numbers<[1], [0], [0], [1], [0, 0, 1, 1], [], []>} : vector<16x111xf32>, vector<111x128xf32>, vector<16x128xf32> -> vector<16x128xf32>
    %10 = arith.mulf %8, %8 : vector<16x128xf32>
    %11 = arith.mulf %9, %9 : vector<16x128xf32>
    %c64_i32 = arith.constant 64 : i32
    %12 = tpu.dynamic_rotate %10 by %c64_i32 dim 1 : vector<16x128xf32>, i32 -> vector<16x128xf32>
    %13 = arith.addf %10, %12 : vector<16x128xf32>
    %c64_i32_9 = arith.constant 64 : i32
    %14 = tpu.dynamic_rotate %11 by %c64_i32_9 dim 1 : vector<16x128xf32>, i32 -> vector<16x128xf32>
    %15 = arith.addf %11, %14 : vector<16x128xf32>
    %16 = math.sqrt %13 : vector<16x128xf32>
    %cst_10 = arith.constant 1.000000e-07 : f32
    %17 = vector.broadcast %cst_10 : f32 to vector<16x128xf32>
    %18 = arith.addf %16, %17 : vector<16x128xf32>
    %19 = math.sqrt %15 : vector<16x128xf32>
    %cst_11 = arith.constant 1.000000e-07 : f32
    %20 = vector.broadcast %cst_11 : f32 to vector<16x128xf32>
    %21 = arith.addf %19, %20 : vector<16x128xf32>
    %22 = arith.subf %18, %21 : vector<16x128xf32>
    %23 = arith.addf %18, %21 : vector<16x128xf32>
    %24 = arith.divf %18, %21 : vector<16x128xf32>
    %25 = math.log %24 : vector<16x128xf32>
    %26 = math.absf %25 : vector<16x128xf32>
    %27 = tpu.iota {dimensions = array<i32: 1>} : vector<16x128xi32>
    %28 = tpu.iota {dimensions = array<i32: 0>} : vector<16x128xi32>
    %c56_i32 = arith.constant 56 : i32
    %29 = vector.broadcast %c56_i32 : i32 to vector<16x128xi32>
    %30 = arith.cmpi slt, %27, %29 : vector<16x128xi32>
    %c16_i32 = arith.constant 16 : i32
    %31 = arith.muli %arg1, %c16_i32 : i32
    %32 = vector.broadcast %31 : i32 to vector<16x128xi32>
    %33 = arith.addi %32, %28 : vector<16x128xi32>
    %c16_i32_12 = arith.constant 16 : i32
    %34 = vector.broadcast %c16_i32_12 : i32 to vector<16x128xi32>
    %35 = arith.cmpi slt, %33, %34 : vector<16x128xi32>
    %36 = arith.andi %30, %35 : vector<16x128xi1>
    %cst_13 = arith.constant 0.000000e+00 : f32
    %37 = vector.broadcast %cst_13 : f32 to vector<16x128xf32>
    %c0_14 = arith.constant 0 : index
    %38 = memref.load %arg6[%c0_14] : memref<3xf32, #tpu.memory_space<smem>>
    %39 = arith.mulf %22, %22 : vector<16x128xf32>
    %40 = arith.select %36, %39, %37 : vector<16x128xi1>, vector<16x128xf32>
    %41 = vector.shape_cast %40 : vector<16x128xf32> to vector<1x16x128xf32>
    %cst_15 = arith.constant dense<0.000000e+00> : vector<1xf32>
    %42 = vector.multi_reduction <add>, %41, %cst_15 [1, 2] : vector<1x16x128xf32> to vector<1xf32>
    %43 = vector.shape_cast %42 : vector<1xf32> to vector<1x1x1xf32>
    %44 = vector.extract %43[0, 0, 0] : f32 from vector<1x1x1xf32>
    %45 = arith.addf %38, %44 : f32
    %c0_16 = arith.constant 0 : index
    %46 = memref.load %arg6[%c0_16] : memref<3xf32, #tpu.memory_space<smem>>
    memref.store %45, %arg6[%c0_16] : memref<3xf32, #tpu.memory_space<smem>>
    %c1 = arith.constant 1 : index
    %47 = memref.load %arg6[%c1] : memref<3xf32, #tpu.memory_space<smem>>
    %48 = arith.mulf %23, %23 : vector<16x128xf32>
    %49 = arith.select %36, %48, %37 : vector<16x128xi1>, vector<16x128xf32>
    %50 = vector.shape_cast %49 : vector<16x128xf32> to vector<1x16x128xf32>
    %cst_17 = arith.constant dense<0.000000e+00> : vector<1xf32>
    %51 = vector.multi_reduction <add>, %50, %cst_17 [1, 2] : vector<1x16x128xf32> to vector<1xf32>
    %52 = vector.shape_cast %51 : vector<1xf32> to vector<1x1x1xf32>
    %53 = vector.extract %52[0, 0, 0] : f32 from vector<1x1x1xf32>
    %54 = arith.addf %47, %53 : f32
    %c1_18 = arith.constant 1 : index
    %55 = memref.load %arg6[%c1_18] : memref<3xf32, #tpu.memory_space<smem>>
    memref.store %54, %arg6[%c1_18] : memref<3xf32, #tpu.memory_space<smem>>
    %c2 = arith.constant 2 : index
    %56 = memref.load %arg6[%c2] : memref<3xf32, #tpu.memory_space<smem>>
    %57 = arith.select %36, %26, %37 : vector<16x128xi1>, vector<16x128xf32>
    %58 = vector.shape_cast %57 : vector<16x128xf32> to vector<1x16x128xf32>
    %cst_19 = arith.constant dense<0.000000e+00> : vector<1xf32>
    %59 = vector.multi_reduction <add>, %58, %cst_19 [1, 2] : vector<1x16x128xf32> to vector<1xf32>
    %60 = vector.shape_cast %59 : vector<1xf32> to vector<1x1x1xf32>
    %61 = vector.extract %60[0, 0, 0] : f32 from vector<1x1x1xf32>
    %62 = arith.addf %56, %61 : f32
    %c2_20 = arith.constant 2 : index
    %63 = memref.load %arg6[%c2_20] : memref<3xf32, #tpu.memory_space<smem>>
    memref.store %62, %arg6[%c2_20] : memref<3xf32, #tpu.memory_space<smem>>
    %c0_i32_21 = arith.constant 0 : i32
    %64 = arith.cmpi eq, %arg1, %c0_i32_21 : i32
    %65 = arith.extui %64 : i1 to i32
    %c0_i32_22 = arith.constant 0 : i32
    %66 = arith.cmpi ne, %65, %c0_i32_22 : i32
    scf.if %66 {
      %67 = tpu.iota {dimensions = array<i32: 2>} : vector<1x1x128xi32>
      %c0_i32_23 = arith.constant 0 : i32
      %68 = vector.broadcast %c0_i32_23 : i32 to vector<1x1x128xi32>
      %69 = arith.cmpi eq, %67, %68 : vector<1x1x128xi32>
      %c0_24 = arith.constant 0 : index
      %70 = memref.load %arg6[%c0_24] : memref<3xf32, #tpu.memory_space<smem>>
      %cst_25 = arith.constant 0.000000e+00 : f32
      %71 = vector.broadcast %70 : f32 to vector<1x1x128xf32>
      %72 = vector.broadcast %cst_25 : f32 to vector<1x1x128xf32>
      %73 = arith.select %69, %71, %72 : vector<1x1x128xi1>, vector<1x1x128xf32>
      %c1_i32 = arith.constant 1 : i32
      %74 = vector.broadcast %c1_i32 : i32 to vector<1x1x128xi32>
      %75 = arith.cmpi eq, %67, %74 : vector<1x1x128xi32>
      %c1_26 = arith.constant 1 : index
      %76 = memref.load %arg6[%c1_26] : memref<3xf32, #tpu.memory_space<smem>>
      %cst_27 = arith.constant 0.000000e+00 : f32
      %77 = vector.broadcast %76 : f32 to vector<1x1x128xf32>
      %78 = vector.broadcast %cst_27 : f32 to vector<1x1x128xf32>
      %79 = arith.select %75, %77, %78 : vector<1x1x128xi1>, vector<1x1x128xf32>
      %80 = arith.addf %73, %79 : vector<1x1x128xf32>
      %c2_i32 = arith.constant 2 : i32
      %81 = vector.broadcast %c2_i32 : i32 to vector<1x1x128xi32>
      %82 = arith.cmpi eq, %67, %81 : vector<1x1x128xi32>
      %c2_28 = arith.constant 2 : index
      %83 = memref.load %arg6[%c2_28] : memref<3xf32, #tpu.memory_space<smem>>
      %cst_29 = arith.constant 0.000000e+00 : f32
      %84 = vector.broadcast %83 : f32 to vector<1x1x128xf32>
      %85 = vector.broadcast %cst_29 : f32 to vector<1x1x128xf32>
      %86 = arith.select %82, %84, %85 : vector<1x1x128xi1>, vector<1x1x128xf32>
      %87 = arith.addf %80, %86 : vector<1x1x128xf32>
      %c0_30 = arith.constant 0 : index
      %c0_31 = arith.constant 0 : index
      %c0_32 = arith.constant 0 : index
      %88 = vector.load %arg5[%c0_30, %c0_31, %c0_32] : memref<1x1x128xf32, #tpu.memory_space<vmem>>, vector<1x1x128xf32>
      tpu.vector_store %arg5[%c0_30, %c0_31, %c0_32], %87 {strides = array<i32>} : memref<1x1x128xf32, #tpu.memory_space<vmem>>, vector<1x1x128xf32>,
    } else {
    }
    return
  }
  func.func @transform_0(%arg0: i32, %arg1: i32) -> (i32, i32, i32) {
    %c0_i32 = arith.constant 0 : i32
    %c0_i32_0 = arith.constant 0 : i32
    return %arg0, %arg1, %c0_i32 : i32, i32, i32
  }
  func.func @transform_1(%arg0: i32, %arg1: i32) -> (i32, i32, i32) {
    %c0_i32 = arith.constant 0 : i32
    %c0_i32_0 = arith.constant 0 : i32
    return %arg0, %arg1, %c0_i32 : i32, i32, i32
  }
  func.func @transform_2(%arg0: i32, %arg1: i32) -> (i32, i32) {
    %c0_i32 = arith.constant 0 : i32
    %c0_i32_0 = arith.constant 0 : i32
    %c0_i32_1 = arith.constant 0 : i32
    return %c0_i32, %c0_i32_0 : i32, i32
  }
  func.func @transform_3(%arg0: i32, %arg1: i32) -> (i32, i32, i32) {
    %c0_i32 = arith.constant 0 : i32
    %c0_i32_0 = arith.constant 0 : i32
    %c0_i32_1 = arith.constant 0 : i32
    return %arg0, %c0_i32, %c0_i32_0 : i32, i32, i32
  }
}

</mosaic_0001>

<bundles_post_ra>
// kernel: tpu_custom_call.1
= control target key start
LH: loop header
LB: loop body
LE: loop exit
PB: predicated region body
PF: predicated region fallthrough
CT: control target
= control target key end

     0   :  { %s1521_s0 = inlined_call_operand.hbm [shape: f32[2,16,111], index: 0, kind: input, shape index: {}]   ;;  %s1522_s1 = inlined_call_operand.hbm [shape: f32[2,16,111], index: 1, kind: input, shape index: {}]   ;;  %s1523_s2 = inlined_call_operand.hbm [shape: f32[111,128], index: 2, kind: input, shape index: {}]   ;;  %s1524_s3 = inlined_call_operand.hbm [shape: f32[2,1,128], index: 3, kind: output, shape index: {}]  }
   0x1   :  { %1532 = sst [smem:[#allocation14_spill]] %s1521_s0 }
   0x2   :  { %1533 = sst [smem:[#allocation15_spill]] %s1523_s2 }
   0x3   :  { %8 = vsyncpa [#allocation4], 0 }
   0x4   :  { %10 = vsyncpa [#allocation4 + $0x1], 0 }
   0x5   :  { %11 = vsyncpa [#allocation7], 0 }
   0x6   :  { %13 = vsyncpa [#allocation7 + $0x1], 0 }
   0x7   :  { %14 = vsyncpa [#allocation5], 0 }
   0x8   :  { %16 = vsyncpa [#allocation5 + $0x1], 0  ;;  %s1226_s12 = smov 0   ;;  %s1228_s13 = smov 0  }
   0x9   :  { %s1230_s14 = smov 0   ;;  %s1232_s15 = smov 0  }
   0xa   :  { %s1234_s16 = smov 0   ;;  %s1236_s17 = smov 0  }
   0xb LB: > { %s1257_s18 = sadd.s32 4294967295, %s1196_s17   ;;  %s731_s19 = sadd.s32 4294967294, %s1196_s17   ;;  %s1196_s17 = sphi %s1236_s17, %s22_s17   ;;  %s1192_s16 = sphi %s1234_s16, %s1556_s16   ;;  %s1188_s15 = sphi %s1232_s15, %s1555_s15   ;;  %s1184_s14 = sphi %s1230_s14, %s1554_s14   ;;  %s1180_s13 = sphi %s1228_s13, %s1553_s13   ;;  %s1176_s12 = sphi %s1226_s12, %s1552_s12  }
   0xc   : > { %p56_p0 = scmp.ne.s32.totalorder %s1180_s13, %s1176_s12  ;;  %p1525_p1 = scmp.eq.s32.totalorder %s1257_s18, 0 }
   0xd   : > { %p135_p3 = scmp.eq.s32.totalorder %s731_s19, 1  ;;  %p732_p5 = scmp.ge.s32.totalorder %s1196_s17, 1 }
   0xe   : > { %p1266_p4 = por %p1525_p1, %p56_p0  ;;  %p142_p7 = scmp.lt.s32.totalorder %s1196_s17, 3 }
   0xf   : > { %p1271_p6 = por %p135_p3, %p56_p0  ;;  %s1198_s23 = smov [#allocation8]  }
  0x10   : > { %s1534_s20 = scalar_select %p1266_p4, 1, 0 }
  0x11   : > { %s1535_s21 = scalar_select %p1271_p6, 1, 0 }
  0x12   : > { %p1276_p8 = pnand %p732_p5, %p142_p7  ;;  %s154_s24 = sshll.u32 %s1198_s23, 4  ;;  %s155_s24 = int_to_ptr.vmem [resolvable:$true] %s154_s24 }
  0x13   : > { %s34_s26 = sadd.s32 1, %s1192_s16  ;;  %s1538_s2 = sld [smem:[#allocation15_spill]] }
  0x14   : > { %s1536_s22 = scalar_select %p1276_p8, 1, 0 }
  0x15   : > { %p930_p9 = pneg %p1276_p8 }
  0x17   : > { %p1285_p11 = pnand %p930_p9, %p1525_p1 }
  0x19   : > { %s1018_s29 = scalar_lea.hbm %s1538_s2, 1792  ;;  %p1020_p13 = pneg %p1285_p11 }
  0x1a   : > { %p1019_p12 = scmp.ne.s32.totalorder %s1538_s2, %s1018_s29  ;;  %p1025_p5 = scmp.lt.u32.totalorder %s1018_s29, %s1538_s2 }
  0x1c   : > { %p1021_p0 = pnand %p1020_p13, %p1019_p12 }
  0x1e   : > { %p1022_p3 = pneg %p1021_p0 }
  0x20   : > { %p1027_p7 = pnand %p1025_p5, %p1022_p3 }
  0x22   : > { %1030 = shalt.err (!%p1027_p7)
}
  0x23   : > { %s1031_s7 = scalar_lea.vmem %s155_s24, 1792  ;;  %p1039_p2 = scmp.lt.s32.totalorder %s155_s24, %s155_s24 }
  0x24   : > { %p1032_p9 = scmp.ne.s32.totalorder %s155_s24, %s1031_s7  ;;  %p1040_p6 = scmp.lt.s32.totalorder %s1031_s7, %s1031_s7 }
  0x26   : > { %p1034_p10 = pnand %p1032_p9, %p1020_p13  ;;  %p1041_p4 = por %p1040_p6, %p1039_p2 }
  0x28   : > { %p1035_p1 = pneg %p1034_p10 }
  0x2a   : > { %p1042_p8 = pnand %p1041_p4, %p1035_p1 }
  0x2c   : > { %1045 = shalt.err (!%p1042_p8)
}
  0x2d   : > { %s1528_s8 = smov 128   ;;  %s1530_s9 = smov 8  }
  0x2e   : > { %933 = dma.hbm_to_vmem [thread:$0]  (!%p1285_p11), %s1538_s2, 1792, %s155_s24, [#allocation7], %s1528_s8, %s1528_s8, %s1530_s9  }
  0x2f   : > { %p36_p1 = scmp.ge.s32.totalorder %s34_s26, 2  ;;  %s43_s19 = sadd.s32 1, %s1184_s14 }
  0x30   : > { %p50_p2 = scmp.ne.s32.totalorder %s1184_s14, %s1180_s13  ;;  %p51_p4 = scmp.eq.s32.totalorder %s1196_s17, 0 }
  0x31   : > { %s1558_s26 = smov (%p36_p1, %s34_s26), 0  ;;  %p1540_p8 = scmp.eq.s32.totalorder %s1257_s18, 1 }
  0x32   : > { %p1315_p6 = por %p51_p4, %p50_p2  ;;  %s38_s27 = ssub.s32 %s1192_s16, %s1558_s26 }
  0x33   : > { %p1321_p10 = por %p1540_p8, %p50_p2  ;;  %p946_p12 = scmp.lt.s32.totalorder %s1196_s17, 2 }
  0x34   : > { %p41_p11 = scmp.eq.s32.totalorder %s38_s27, 0  ;;  %s168_s24 = sand.u32 1, %s1184_s14  }
  0x35   : > { %s735_s28 = sshll.u32 %s168_s24, 4  ;;  %s758_s30 = sshll.u32 %s1192_s16, 8 }
  0x36   : > { %s1330_s29 = scalar_select %p41_p11, %s1184_s14, %s43_s19  }
  0x37   : > { %s1542_s0 = sld [smem:[#allocation14_spill]]  ;;  %s172_s7 = scalar_lea.vmem [#allocation3], %s735_s28 }
  0x38   : > { %s181_s10 = sshll.u32 %s172_s7, 4  ;;  %p1342_p13 = pnand %p946_p12, %p1315_p6  ;;  %s1338_s10 = int_to_ptr.vmem [resolvable:$true] %s181_s10 }
  0x39   : > { %s1349_s4 = scalar_lea.hbm %s1522_s1, %s758_s30  ;;  %s195_s5 = scalar_lea.vmem [#allocation6], %s735_s28 }
  0x3a   : > { %s1351_s8 = sshll.u32 %s195_s5, 4  ;;  %s1353_s9 = scalar_lea.sflag [#allocation4], %s168_s24  ;;  %s1385_s8 = int_to_ptr.vmem [resolvable:$true] %s1351_s8 }
  0x3b   : > { %p1048_p3 = pneg %p1342_p13 }
  0x3d   : > { %s1336_s6 = scalar_lea.hbm %s1542_s0, %s758_s30  ;;  %s1051_s19 = scalar_lea.hbm %s1542_s0, 512 }
  0x3e   : > { %s1046_s7 = scalar_lea.hbm %s1336_s6, 256  ;;  %p1052_p9 = scmp.lt.u32.totalorder %s1336_s6, %s1542_s0 }
  0x3f   : > { %p1047_p0 = scmp.ne.s32.totalorder %s1336_s6, %s1046_s7  ;;  %p1053_p1 = scmp.lt.u32.totalorder %s1051_s19, %s1046_s7 }
  0x40   : > { %p1055_p4 = scmp.lt.u32.totalorder %s1046_s7, %s1336_s6 }
  0x41   : > { %p1049_p5 = pnand %p1048_p3, %p1047_p0  ;;  %p1054_p2 = por %p1053_p1, %p1052_p9 }
  0x43   : > { %p1050_p7 = pneg %p1049_p5  ;;  %p1056_p6 = por %p1055_p4, %p1054_p2 }
  0x45   : > { %p1057_p8 = pnand %p1056_p6, %p1050_p7 }
  0x47   : > { %1060 = shalt.err (!%p1057_p8)
}
  0x48   : > { %s1061_s24 = scalar_lea.vmem %s1338_s10, 256  ;;  %s1201_s2 = smov [#allocation3]  }
  0x49   : > { %p1062_p12 = scmp.ne.s32.totalorder %s1338_s10, %s1061_s24  ;;  %s1066_s28 = sshll.u32 %s1201_s2, 4  ;;  %s1067_s28 = int_to_ptr.vmem [resolvable:$false] %s1066_s28 }
  0x4a   : > { %s1068_s5 = scalar_lea.vmem %s1067_s28, 512  ;;  %p1069_p5 = scmp.lt.s32.totalorder %s1338_s10, %s1067_s28 }
  0x4b   : > { %p1064_p11 = pnand %p1062_p12, %p1048_p3  ;;  %p1070_p9 = scmp.lt.s32.totalorder %s1068_s5, %s1061_s24 }
  0x4d   : > { %p1065_p0 = pneg %p1064_p11  ;;  %p1071_p1 = por %p1070_p9, %p1069_p5 }
  0x4f   : > { %p1072_p2 = pnand %p1071_p1, %p1065_p0 }
  0x51   : > { %1075 = shalt.err (!%p1072_p2)
}
  0x52   : > { %s1544_s7 = smov 8   ;;  %s1545_s23 = smov 128  }
  0x53   : > { %937 = dma.hbm_to_vmem [thread:$0]  (!%p1342_p13), %s1336_s6, 256, %s1338_s10, %s1353_s9, %s1545_s23, %s1545_s23, %s1544_s7  }
  0x54   : > { %s191_s19 = sand.u32 1, %s1196_s17   ;;  %s1076_s30 = scalar_lea.hbm %s1349_s4, 256 }
  0x55   : > { %s1388_s27 = scalar_lea.sflag [#allocation7], %s191_s19  ;;  %p1077_p7 = scmp.ne.s32.totalorder %s1349_s4, %s1076_s30 }
  0x56   : > { %s1081_s28 = scalar_lea.hbm %s1522_s1, 512  ;;  %p1082_p8 = scmp.lt.u32.totalorder %s1349_s4, %s1522_s1 }
  0x57   : > { %p1079_p4 = pnand %p1077_p7, %p1048_p3  ;;  %p1083_p12 = scmp.lt.u32.totalorder %s1081_s28, %s1076_s30 }
  0x58   : > { %p1085_p0 = scmp.lt.u32.totalorder %s1076_s30, %s1349_s4 }
  0x59   : > { %p1080_p6 = pneg %p1079_p4  ;;  %p1084_p11 = por %p1083_p12, %p1082_p8 }
  0x5b   : > { %p1086_p5 = por %p1085_p0, %p1084_p11 }
  0x5d   : > { %p1087_p9 = pnand %p1086_p5, %p1080_p6 }
  0x5f   : > { %1090 = shalt.err (!%p1087_p9)
}
  0x60   : > { %s1091_s9 = scalar_lea.vmem %s1385_s8, 256  ;;  %s1202_s6 = smov [#allocation6]  }
  0x61   : > { %p1092_p1 = scmp.ne.s32.totalorder %s1385_s8, %s1091_s9  ;;  %s1096_s10 = sshll.u32 %s1202_s6, 4  ;;  %s1097_s10 = int_to_ptr.vmem [resolvable:$false] %s1096_s10 }
  0x62   : > { %s1098_s0 = scalar_lea.vmem %s1097_s10, 512  ;;  %p1099_p4 = scmp.lt.s32.totalorder %s1385_s8, %s1097_s10 }
  0x63   : > { %p1094_p2 = pnand %p1092_p1, %p1048_p3  ;;  %p1100_p8 = scmp.lt.s32.totalorder %s1098_s0, %s1091_s9 }
  0x65   : > { %p1095_p7 = pneg %p1094_p2  ;;  %p1101_p12 = por %p1100_p8, %p1099_p4 }
  0x67   : > { %p1102_p11 = pnand %p1101_p12, %p1095_p7 }
  0x69   : > { %1105 = shalt.err (!%p1102_p11)
}
  0x6a   : > { %940 = dma.hbm_to_vmem [thread:$0]  (!%p1342_p13), %s1349_s4, 256, %s1385_s8, %s1388_s27, %s1545_s23, %s1545_s23, %s1544_s7  }
  0x6b   : > { %p1546_p3 = scmp.ne.s32.totalorder %s1536_s22, 0 }
  0x6c   : > { %s1420_s19 = sand.u32 (!%p1546_p3), 1, %s1180_s13   ;;  %p1547_p6 = scmp.ne.s32.totalorder (!%p1546_p3), %s1534_s20, 0 }
  0x6d   : > { %216 = sbr.rel (%p1546_p3) target bundleno = 760 (0x2f8), region = 32  ;;  %s742_s30 = sshll.u32 (!%p1546_p3), %s1420_s19, 4 }
  0x6e   : > { %s219_s24 = scalar_lea.sflag (!%p1546_p3), [#allocation4], %s1420_s19  ;;  %s1424_s2 = scalar_lea.vmem (!%p1546_p3), [#allocation3], %s742_s30 }
  0x74   : > { %1159 = dma.done.wait (%p1547_p6), %s219_s24, 256  }
  0x75   : > { %1161 = vsyncadd (%p1547_p6), %s219_s24, 4294967040  ;;  %s227_s8 = sand.u32 1, %s1257_s18   ;;  %s1431_s11 = scalar_lea.vmem [#allocation6], %s742_s30 }
  0x76   : > { %s228_s22 = scalar_lea.sflag [#allocation7], %s227_s8 }
  0x77   : > { %1163 = dma.done.wait (%p1547_p6), %s228_s22, 256  }
  0x78   : > { %1165 = vsyncadd (%p1547_p6), %s228_s22, 4294967040  ;;  %p1548_p13 = scmp.eq.s32.totalorder %s1257_s18, 0 }
  0x7a   : > { %1167 = dma.done.wait (%p1548_p13), [#allocation7], 1792   ;;  %p1549_p0 = pmov %p1548_p13 }
  0x7b   : > { %v278_v0 = vld [vmem:[#allocation8] sm:$0xff]  ;;  %v279_v1 = vld [vmem:[#allocation8 + $0x8] sm:$0xff]  ;;  %v280_v2 = vld [vmem:[#allocation8 + $0x10] sm:$0xff]  ;;  %vm292_vm0 = vcmask 908288   ;;  %vm299_vm1 = vcmask 1046528   ;;  %vm1203_vm2 = vmmov 1   ;;  %v521_v46 = vlaneseq }
  0x7c   : > { %1169 = vsyncadd (%p1549_p0), [#allocation7], 4294965504  ;;  %v854_v3 = vpack.c.bf16 %v279_v1, %v278_v0  ;;  %v281_v4 = vld [vmem:[#allocation8 + $0x18] sm:$0xff]  ;;  %v282_v6 = vld [vmem:[#allocation8 + $0x20] sm:$0xff]  ;;  %s1204_s18 = smov 64   ;;  %s755_s7 = sshll.u32 %s1188_s15, 4 }
  0x7d   : > { %v858_v5 = vpack.c.bf16 %v281_v4, %v280_v2  ;;  %v283_v7 = vld [vmem:[#allocation8 + $0x28] sm:$0xff]  ;;  %v274_v8 = vld [vmem:[%s1424_s2] sm:$0xff]  ;;  %v285_v12 = vld [vmem:[#allocation8 + $0x38] sm:$0xff]  ;;  %s261_s27 = scalar_lea.vmem [#allocation9], %s1420_s19  ;;  %s1472_s6 = scalar_lea.hbm %s1524_s3, %s755_s7 }
  0x7e   : > { %855 = vmatprep.subr.bf16.mxu0 %v854_v3  ;;  %885 = vmatprep.subr.bf16.mxu1 %v854_v3  ;;  %v862_v9 = vpack.c.bf16 %v283_v7, %v282_v6  ;;  %v276_v10 = vld [vmem:[%s1431_s11] sm:$0xff]  ;;  %v287_v15 = vld [vmem:[#allocation8 + $0x48] sm:$0xff]  ;;  %v289_v18 = vld [vmem:[#allocation8 + $0x58] sm:$0xff]  ;;  %s618_s28 = sshll.u32 %s261_s27, 4  ;;  %s606_s10 = scalar_lea.sflag [#allocation5], %s1420_s19  ;;  %s1474_s28 = int_to_ptr.vmem [resolvable:$true] %s618_s28 }
  0x7f   : > { %857 = vmatpush3.bf16.msra.mxu0 %v854_v3  ;;  %887 = vmatpush3.bf16.msra.mxu1 %v854_v3  ;;  %v284_v11 = vld [vmem:[#allocation8 + $0x30] sm:$0xff]  ;;  %v286_v14 = vld [vmem:[#allocation8 + $0x40] sm:$0xff]  ;;  %v291_v21 = vld [vmem:[#allocation8 + $0x68] sm:$0x7f]  ;;  %v1449_v3 = vand.u32 127, %v521_v46  ;;  %s1106_s15 = scalar_lea.vmem %s1474_s28, 16 }
  0x80   : > { %859 = vmatprep.subr.bf16.mxu0 %v858_v5  ;;  %889 = vmatprep.subr.bf16.mxu1 %v858_v5  ;;  %v866_v13 = vpack.c.bf16 %v285_v12, %v284_v11  ;;  %v870_v16 = vpack.c.bf16 %v287_v15, %v286_v14  ;;  %v288_v17 = vld [vmem:[#allocation8 + $0x50] sm:$0xff]  ;;  %v290_v20 = vld [vmem:[#allocation8 + $0x60] sm:$0xff]  ;;  %vm879_vm3 = vmpackc.low %vm299_vm1, %vm1203_vm2  ;;  %p1107_p5 = scmp.ne.s32.totalorder %s1474_s28, %s1106_s15  ;;  %s1205_s0 = smov [#allocation9]  }
  0x81   : > { %820 = vmatprep.mubr.msk.f32.mxu0 %vm292_vm0, %v274_v8  ;;  %851 = vmatprep.mubr.msk.f32.mxu1 %vm292_vm0, %v276_v10  ;;  %v874_v19 = vpack.c.bf16 %v289_v18, %v288_v17  ;;  %v878_v22 = vpack.c.bf16 %v291_v21, %v290_v20  ;;  %v275_v23 = vld [vmem:[%s1424_s2 + $0x8] sm:$0xff]  ;;  %vm526_vm12 = vcmp.lt.s32.totalorder %v1449_v3, 56  ;;  %vm590_vm13 = vcmp.eq.s32.totalorder %v1449_v3, 0  ;;  %s1110_s30 = sshll.u32 %s1205_s0, 4  ;;  %s1111_s30 = int_to_ptr.vmem [resolvable:$false] %s1110_s30 }
  0x82   : > { %v277_v24 = vld [vmem:[%s1431_s11 + $0x8] sm:$0xff]  ;;  %vm594_vm14 = vcmp.eq.s32.totalorder %v1449_v3, 1  ;;  %vm599_vm15 = vcmp.eq.s32.totalorder %v1449_v3, 2  ;;  %p1108_p9 = pnand %p1107_p5, %p1321_p10  ;;  %s1112_s24 = scalar_lea.vmem %s1111_s30, 32 }
  0x83   : > { %861 = vmatpush3.bf16.msra.mxu0 %v858_v5  ;;  %891 = vmatpush3.bf16.msra.mxu1 %v858_v5  ;;  %p1113_p2 = scmp.lt.s32.totalorder %s1474_s28, %s1111_s30  ;;  %p1114_p7 = scmp.lt.s32.totalorder %s1112_s24, %s1106_s15 }
  0x84   : > { %863 = vmatprep.subr.bf16.mxu0 %v862_v9  ;;  %893 = vmatprep.subr.bf16.mxu1 %v862_v9  ;;  %p1109_p1 = pneg %p1108_p9 }
  0x85   : > { %p1115_p4 = por %p1114_p7, %p1113_p2 }
  0x87   : > { %865 = vmatpush3.bf16.msra.mxu0 %v862_v9  ;;  %895 = vmatpush3.bf16.msra.mxu1 %v862_v9  ;;  %p1116_p8 = pnand %p1115_p4, %p1109_p1 }
  0x88   : > { %867 = vmatprep.subr.bf16.mxu0 %v866_v13  ;;  %897 = vmatprep.subr.bf16.mxu1 %v866_v13 }
  0x8b   : > { %869 = vmatpush3.bf16.msra.mxu0 %v866_v13  ;;  %899 = vmatpush3.bf16.msra.mxu1 %v866_v13 }
  0x8c   : > { %871 = vmatprep.subr.bf16.mxu0 %v870_v16  ;;  %901 = vmatprep.subr.bf16.mxu1 %v870_v16 }
  0x8f   : > { %873 = vmatpush3.bf16.msra.mxu0 %v870_v16  ;;  %903 = vmatpush3.bf16.msra.mxu1 %v870_v16 }
  0x90   : > { %875 = vmatprep.subr.bf16.mxu0 %v874_v19  ;;  %905 = vmatprep.subr.bf16.mxu1 %v874_v19 }
  0x93   : > { %877 = vmatpush3.bf16.msra.mxu0 %v874_v19  ;;  %907 = vmatpush3.bf16.msra.mxu1 %v874_v19 }
  0x94   : > { %880 = vmatprep.subr.msk.bf16.mxu0 %vm879_vm3, %v878_v22  ;;  %910 = vmatprep.subr.msk.bf16.mxu1 %vm879_vm3, %v878_v22 }
  0x97   : > { %883 = vmatpush3.bf16.msk.msra.mxu0 %vm879_vm3, %v878_v22  ;;  %913 = vmatpush3.bf16.msk.msra.mxu1 %vm879_vm3, %v878_v22 }
  0x9a   : > { %821 = vmatmul.mubr.msk.f32.vlgmr.msra.gmra.mrb[0].mxu0 %vm292_vm0, %v275_v23  ;;  %852 = vmatmul.mubr.msk.f32.vlgmr.msra.gmra.mrb[0].mxu1 %vm292_vm0, %v277_v24 }
 0x16d   : > { %v822_v25 = vpop.f32.mrb[0].mxu0  ;;  %v853_v26 = vpop.f32.mrb[0].mxu1 }
 0x16e   : > { %v369_v27 = vpop.f32.mrb[1].mxu0  ;;  %v450_v28 = vpop.f32.mrb[1].mxu1  ;;  %v460_v31 = vmul.f32 %v822_v25, %v822_v25  ;;  %v462_v32 = vmul.f32 %v853_v26, %v853_v26 }
 0x16f   : > { %v459_v29 = vmul.f32 %v369_v27, %v369_v27  ;;  %v461_v30 = vmul.f32 %v450_v28, %v450_v28 }
 0x171   : > { %469 = vrot.lane.b32.xlu0 %v461_v30, %s1204_s18  ;;  %463 = vrot.lane.b32.xlu1 %v459_v29, %s1204_s18 }
 0x175   : > { %471 = vrot.lane.b32.xlu0 %v462_v32, %s1204_s18  ;;  %465 = vrot.lane.b32.xlu1 %v460_v31, %s1204_s18 }
 0x1e3   : > { %v470_v33 = vpop.permute.xlu0 %469  ;;  %v464_v34 = vpop.permute.xlu1 %463 }
 0x1e4   : > { %v473_v35 = vadd.f32 %v470_v33, %v461_v30  ;;  %v467_v36 = vadd.f32 %v464_v34, %v459_v29 }
 0x1e6   : > { %1002 = vrsqrt.f32 %v473_v35  ;;  %vm493_vm4 = vcmp.eq.f32.partialorder %v473_v35, inf  ;;  %v496_v45 = vand.u32 2147483648, %v473_v35  ;;  %vm477_vm5 = vcmp.eq.f32.partialorder %v467_v36, inf }
 0x1e7   : > { %1004 = vrsqrt.f32 %v467_v36  ;;  %v472_v37 = vpop.permute.xlu0 %471  ;;  %v466_v38 = vpop.permute.xlu1 %465  ;;  %v480_v47 = vand.u32 2147483648, %v467_v36  ;;  %vm495_vm6 = vcmp.eq.f32.partialorder %v473_v35, 0.0  ;;  %vm479_vm7 = vcmp.eq.f32.partialorder %v467_v36, 0.0 }
 0x1e8   : > { %v474_v39 = vadd.f32 %v472_v37, %v462_v32  ;;  %v468_v40 = vadd.f32 %v466_v38, %v460_v31 }
 0x1ea   : > { %1006 = vrsqrt.f32 %v474_v39  ;;  %vm484_vm8 = vcmp.eq.f32.partialorder %v468_v40, inf  ;;  %vm486_vm9 = vcmp.eq.f32.partialorder %v468_v40, 0.0  ;;  %vm500_vm10 = vcmp.eq.f32.partialorder %v474_v39, inf }
 0x1eb   : > { %1008 = vrsqrt.f32 %v468_v40  ;;  %v503_v58 = vand.u32 2147483648, %v474_v39  ;;  %v487_v59 = vand.u32 2147483648, %v468_v40  ;;  %vm502_vm11 = vcmp.eq.f32.partialorder %v474_v39, 0.0 }
 0x1f0   : > { %v1003_v41 = vpop.eup %1002 }
 0x1f1   : > { %v1005_v42 = vpop.eup %1004  ;;  %v492_v43 = vmul.f32 %v1003_v41, %v473_v35 }
 0x1f2   : > { %v476_v44 = vmul.f32 %v1005_v42, %v467_v36 }
 0x1f3   : > { %v494_v48 = vsel %vm493_vm4, %v473_v35, %v492_v43 }
 0x1f4   : > { %v1007_v49 = vpop.eup %1006  ;;  %v478_v50 = vsel %vm477_vm5, %v467_v36, %v476_v44  ;;  %v497_v51 = vsel %vm495_vm6, %v496_v45, %v494_v48 }
 0x1f5   : > { %v1009_v52 = vpop.eup %1008  ;;  %v481_v53 = vsel %vm479_vm7, %v480_v47, %v478_v50  ;;  %v499_v54 = vmul.f32 %v1007_v49, %v474_v39  ;;  %v505_v55 = vadd.f32 1e-07, %v497_v51 }
 0x1f6   : > { %v483_v56 = vmul.f32 %v1009_v52, %v468_v40  ;;  %v489_v57 = vadd.f32 1e-07, %v481_v53 }
 0x1f7   : > { %v501_v60 = vsel %vm500_vm10, %v474_v39, %v499_v54  ;;  %1010 = vrcp.f32 %v505_v55 }
 0x1f8   : > { %v485_v61 = vsel %vm484_vm8, %v468_v40, %v483_v56  ;;  %v504_v62 = vsel %vm502_vm11, %v503_v58, %v501_v60  ;;  %v509_v63 = vadd.f32 %v505_v55, %v489_v57  ;;  %v507_v0 = vsub.f32 %v489_v57, %v505_v55 }
 0x1f9   : > { %v488_v1 = vsel %vm486_vm9, %v487_v59, %v485_v61  ;;  %v506_v2 = vadd.f32 1e-07, %v504_v62 }
 0x1fa   : > { %v490_v4 = vadd.f32 1e-07, %v488_v1  ;;  %v554_v6 = vmul.f32 %v509_v63, %v509_v63  ;;  %v536_v8 = vmul.f32 %v507_v0, %v507_v0 }
 0x1fb   : > { %1012 = vrcp.f32 %v506_v2 }
 0x1fc   : > { %v510_v5 = vadd.f32 %v506_v2, %v490_v4  ;;  %v508_v7 = vsub.f32 %v490_v4, %v506_v2  ;;  %v556_v11 = vsel %vm526_vm12, %v554_v6, 0.0  ;;  %v538_v13 = vsel %vm526_vm12, %v536_v8, 0.0 }
 0x1fe   : > { %v555_v9 = vmul.f32 %v510_v5, %v510_v5  ;;  %v537_v10 = vmul.f32 %v508_v7, %v508_v7 }
 0x200   : > { %v557_v12 = vsel %vm526_vm12, %v555_v9, 0.0  ;;  %v539_v14 = vsel %vm526_vm12, %v537_v10, 0.0 }
 0x201   : > { %v1011_v15 = vpop.eup %1010  ;;  %v558_v16 = vadd.f32 %v557_v12, %v556_v11  ;;  %v540_v17 = vadd.f32 %v539_v14, %v538_v13 }
 0x202   : > { %v512_v18 = vmul.f32 %v1011_v15, %v489_v57 }
 0x203   : > { %559 = vadd.xlane.f32.xlu1 %v558_v16  ;;  %541 = vadd.xlane.f32.xlu0 %v540_v17 }
 0x204   : > { %1014 = vlog2.f32 %v512_v18 }
 0x205   : > { %v1013_v19 = vpop.eup %1012 }
 0x206   : > { %v514_v20 = vmul.f32 %v1013_v19, %v490_v4 }
 0x208   : > { %1016 = vlog2.f32 %v514_v20 }
 0x20e   : > { %v1015_v21 = vpop.eup %1014 }
 0x20f   : > { %v516_v22 = vmul.f32 0.6931472, %v1015_v21 }
 0x211   : > { %v519_v25 = vand.u32 2147483647, %v516_v22 }
 0x212   : > { %v1017_v23 = vpop.eup %1016 }
 0x213   : > { %v518_v24 = vmul.f32 0.6931472, %v1017_v23  ;;  %v572_v27 = vsel %vm526_vm12, %v519_v25, 0.0 }
 0x215   : > { %v520_v26 = vand.u32 2147483647, %v518_v24 }
 0x217   : > { %v573_v28 = vsel %vm526_vm12, %v520_v26, 0.0 }
 0x218   : > { %v574_v29 = vadd.f32 %v573_v28, %v572_v27 }
 0x21a   : > { %575 = vadd.xlane.f32.xlu0 %v574_v29 }
 0x290   : > { %v560_v30 = vpop.xlane.xlu1 %559  ;;  %v542_v31 = vpop.xlane.xlu0 %541 }
 0x291   : > { %v561_v32 = vrot.slane %v560_v30, 4  ;;  %v543_v33 = vrot.slane %v542_v31, 4 }
 0x293   : > { %v562_v34 = vadd.f32 %v561_v32, %v560_v30  ;;  %v544_v35 = vadd.f32 %v543_v33, %v542_v31 }
 0x295   : > { %v563_v36 = vrot.slane %v562_v34, 2  ;;  %v545_v37 = vrot.slane %v544_v35, 2 }
 0x297   : > { %v564_v38 = vadd.f32 %v563_v36, %v562_v34  ;;  %v546_v39 = vadd.f32 %v545_v37, %v544_v35 }
 0x299   : > { %v547_v40 = vrot.slane %v546_v39, 1  ;;  %v565_v41 = vrot.slane %v564_v38, 1 }
 0x29b   : > { %v548_v42 = vadd.f32 %v547_v40, %v546_v39  ;;  %v566_v43 = vadd.f32 %v565_v41, %v564_v38 }
 0x29d   : > { %914 = vpush %v548_v42 }
 0x29e   : > { %916 = vpush %v566_v43 }
 0x2a7   : > { %v576_v44 = vpop.xlane.xlu0 %575 }
 0x2a8   : > { %v577_v45 = vrot.slane %v576_v44, 4 }
 0x2aa   : > { %v578_v46 = vadd.f32 %v577_v45, %v576_v44 }
 0x2ac   : > { %v579_v47 = vrot.slane %v578_v46, 2 }
 0x2ae   : > { %v580_v48 = vadd.f32 %v579_v47, %v578_v46 }
 0x2b0   : > { %v581_v49 = vrot.slane %v580_v48, 1 }
 0x2b2   : > { %v582_v50 = vadd.f32 %v581_v49, %v580_v48 }
 0x2b4   : > { %918 = vpush %v582_v50 }
 0x2ce   : > { %s915_s20 = spop %914 }
 0x2cf   : > { %s917_s4 = spop %916  ;;  %v592_v51 = vstv %s915_s20 }
 0x2d0   : > { %v596_v52 = vstv %s917_s4  ;;  %v593_v53 = vsel %vm590_vm13, %v592_v51, 0.0 }
 0x2d1   : > { %v597_v54 = vsel %vm594_vm14, %v596_v52, 0.0 }
 0x2d2   : > { %v598_v55 = vadd.f32 %v597_v54, %v593_v53 }
 0x2e5   : > { %s919_s23 = spop %918 }
 0x2e6   : > { %v601_v56 = vstv %s919_s23 }
 0x2e7   : > { %v602_v57 = vsel %vm599_vm15, %v601_v56, 0.0 }
 0x2e8   : > { %v603_v58 = vadd.f32 %v602_v57, %v598_v55 }
 0x2ea   : > { %604 = vst [vmem:[%s261_s27] sm:$0x1] %v603_v58 }
 0x2eb   : > { %1119 = shalt.err (!%p1116_p8)
}
 0x2ec   : > { %s1120_s19 = scalar_lea.hbm %s1472_s6, 16  ;;  %s1124_s22 = scalar_lea.hbm %s1524_s3, 32 }
 0x2ed   : > { %p1121_p12 = scmp.ne.s32.totalorder %s1472_s6, %s1120_s19  ;;  %p1125_p6 = scmp.lt.u32.totalorder %s1472_s6, %s1524_s3 }
 0x2ee   : > { %p1126_p13 = scmp.lt.u32.totalorder %s1124_s22, %s1120_s19  ;;  %p1128_p5 = scmp.lt.u32.totalorder %s1120_s19, %s1472_s6 }
 0x2ef   : > { %p1122_p11 = pnand %p1121_p12, %p1321_p10 }
 0x2f0   : > { %p1127_p0 = por %p1126_p13, %p1125_p6 }
 0x2f1   : > { %p1123_p3 = pneg %p1122_p11 }
 0x2f2   : > { %p1129_p9 = por %p1128_p5, %p1127_p0 }
 0x2f4   : > { %p1130_p1 = pnand %p1129_p9, %p1123_p3 }
 0x2f6   : > { %1133 = shalt.err (!%p1130_p1)
}
 0x2f7   : > { %928 = dma.vmem_to_hbm [thread:$0]  (%p1321_p10), %s1474_s28, 16, %s1472_s6, %s606_s10  }
 0x2f8 PF: > { %s630_s20 = sand.u32 1, %s1176_s12   ;;  %p1550_p2 = scmp.ne.s32.totalorder %s1535_s21, 0 }
 0x2f9   : > { %p1551_p7 = scmp.ge.s32.totalorder %s1196_s17, 2  ;;  %s631_s4 = scalar_lea.sflag [#allocation5], %s630_s20 }
 0x2fb   : > { %p942_p4 = pnand %p1551_p7, %p1550_p2 }
 0x2fd   : > { %1171 = dma.done.wait (!%p942_p4), %s631_s4, 16  }
 0x2fe   : > { %1173 = vsyncadd (!%p942_p4), %s631_s4, 4294967280  ;;  %s22_s17 = sadd.s32 1, %s1196_s17   ;;  %s1552_s12 = smov %s1180_s13 }
 0x2ff   : > { %p19_p8 = scmp.ge.s32.totalorder %s22_s17, 4   ;;  %s1553_s13 = smov %s1184_s14 }
 0x300   : > { %s1554_s14 = smov %s1330_s29  ;;  %s1555_s15 = smov %s1192_s16 }
 0x301   : > { %s1556_s16 = smov %s1558_s26  ;;  %21 = sbr.rel (!%p19_p8) target bundleno = 11 (0xb), region = 108 }
 0x308   :  { %635 = vsyncpa [#allocation4], 1 }
 0x309   :  { %637 = vsyncpa [#allocation4 + $0x1], 1 }
 0x30a   :  { %638 = vsyncpa [#allocation7], 1 }
 0x30b   :  { %640 = vsyncpa [#allocation7 + $0x1], 1 }
 0x30c   :  { %641 = vsyncpa [#allocation5], 1 }
 0x30d   :  { %643 = vsyncpa [#allocation5 + $0x1], 1 }

</bundles_post_ra>
